<compile_context>
chip_gen: v6e
topology: v6e:2x2x1
jax: 0.10.0
libtpu: 0.0.40
codegen_flags: <defaults>
</compile_context>

<pallas_src>
import functools
import math

import jax
import jax.numpy as jnp
import numpy as np
from jax.experimental import pallas as pl
from jax.experimental.pallas import tpu as pltpu

EPS = 1e-5


# ---------------------------------------------------------------------------
# Kernels
# ---------------------------------------------------------------------------
def _conv_stats_kernel(x_ref, scale_ref, shift_ref, band_ref, fold_ref,
                       y_ref, stats_ref, pad_ref, *, prenorm, H):
    """3x3 conv (3 banded MXU matmuls) + per-block BN partial statistics.

    x_ref     : (nb, H, WCp) f32    activation block (lane-dense NHWC slab)
    scale/shift: (1, WCp)   f32     previous-BN affine (used iff prenorm)
    band_ref  : (3, WCp, WCp) bf16  block-banded conv weights, one band per dh
    fold_ref  : (WCp, Cp)   f32     constant 0/1 lane->channel fold matrix
    y_ref     : (nb, H, WCp) f32    conv output block
    stats_ref : (1, 2, Cp)  f32     [sum ; sum-of-squares] over this block
    pad_ref   : (nb*(H+2), WCp) f32 scratch: per-batch H-halo padded rows
    """
    nb = x_ref.shape[0]
    WCp = band_ref.shape[1]
    R = nb * (H + 2)

    zero_row = jnp.zeros((1, WCp), jnp.float32)
    for b in range(nb):                            # static unroll, nb small
        base = b * (H + 2)
        v = x_ref[b]                               # contiguous (H, WCp) view
        if prenorm:                                # bn1 + relu fused in front
            v = jnp.maximum(v * scale_ref[...] + shift_ref[...], 0.0)
        pad_ref[base:base + 1, :] = zero_row                       # top halo
        pad_ref[base + 1:base + 1 + H, :] = v                      # interior
        pad_ref[base + H + 1:base + H + 2, :] = zero_row           # bottom halo

    # One MXU matmul per kernel row dh; each LHS is a contiguous sublane slice
    # of the halo-padded scratch (rows straddling batch boundaries are junk
    # and simply dropped below).  dw taps / W zero-padding live in the band.
    acc = jnp.zeros((R - 2, WCp), jnp.float32)
    for dh in range(3):
        lhs = pad_ref[dh:dh + R - 2, :].astype(jnp.bfloat16)
        acc = acc + jnp.dot(lhs, band_ref[dh],
                            preferred_element_type=jnp.float32)

    # Store valid rows (lane-dense, unmasked vst) and accumulate f32 sums.
    s1 = jnp.zeros((1, WCp), jnp.float32)
    s2 = jnp.zeros((1, WCp), jnp.float32)
    for b in range(nb):
        base = b * (H + 2)
        out_b = acc[base:base + H, :]
        y_ref[b] = out_b
        s1 = s1 + jnp.sum(out_b, axis=0, keepdims=True)
        s2 = s2 + jnp.sum(out_b * out_b, axis=0, keepdims=True)

    # Lane -> channel fold as tiny matmuls riding the otherwise idle MXU slot.
    stats_ref[0, 0:1, :] = jnp.dot(s1, fold_ref[...],
                                   preferred_element_type=jnp.float32)
    stats_ref[0, 1:2, :] = jnp.dot(s2, fold_ref[...],
                                   preferred_element_type=jnp.float32)


def _bn_residual_relu_kernel(y_ref, x_ref, scale_ref, shift_ref, o_ref):
    """out = relu(bn2(conv2_out) + identity shortcut)   (LambdaLayer == id)."""
    for b in range(y_ref.shape[0]):
        o_ref[b] = jnp.maximum(
            y_ref[b] * scale_ref[...] + shift_ref[...] + x_ref[b], 0.0)


# ---------------------------------------------------------------------------
# Host-side packing / tiny glue math
# ---------------------------------------------------------------------------
def _padded_channels(C, W):
    """Smallest Cp >= C with (W * Cp) % 128 == 0 (lane-dense slabs & stores)."""
    q = 128 // math.gcd(W, 128)
    return ((C + q - 1) // q) * q


def _band_weights(w_oihw, W, Cp):
    """(Cout,Cin,3,3) OIHW -> (3, W*Cp, W*Cp) bf16 block-banded matrices.

    band[dh, wi*Cp+ci, wo*Cp+co] = w[co, ci, dh, wi-wo+1] for taps inside the
    image; zeros elsewhere realize the W-direction zero padding.  One-time
    host-side numpy weight packing.
    """
    co_n, ci_n, kh, kw = map(int, w_oihw.shape)
    wp = np.zeros((Cp, Cp, kh, kw), np.float32)
    wp[:co_n, :ci_n] = np.asarray(w_oihw, np.float32)
    wt = np.transpose(wp, (2, 3, 1, 0))                     # (dh, dw, ci, co)
    band = np.zeros((kh, W * Cp, W * Cp), np.float32)
    for dh in range(kh):
        for dw in range(kw):
            blk = wt[dh, dw]
            for wo in range(W):
                wi = wo + dw - 1
                if 0 <= wi < W:
                    band[dh, wi * Cp:(wi + 1) * Cp,
                         wo * Cp:(wo + 1) * Cp] = blk
    return jnp.asarray(band, dtype=jnp.bfloat16)


def _bn_affine(stats, gamma_p, beta_p, M, W):
    """Per-block partial sums -> lane-broadcast BN scale/shift (few-KB JAX op)."""
    tot = jnp.sum(stats, axis=0)                   # (2, Cp)
    mu = tot[0] / M
    var = tot[1] / M - mu * mu                     # biased batch variance
    scale = gamma_p * jax.lax.rsqrt(var + EPS)     # pad channels: gamma 0 -> 0
    shift = beta_p - mu * scale
    Cp = scale.shape[0]
    return (jnp.tile(scale.reshape(1, Cp), (1, W)),
            jnp.tile(shift.reshape(1, Cp), (1, W)))


# ---------------------------------------------------------------------------
# Block forward on lane-dense slabs (production entry point)
# ---------------------------------------------------------------------------
def basic_block_slab(x_slab, band1, band2, g1p, b1p, g2p, b2p,
                     *, H, W, Cp, batches_per_block=1):
    """BasicBlock on lane-dense slabs (N, H, W*Cp); returns the same layout.

    In a full network this slab layout persists from block to block, so there
    are no per-block NCHW<->NHWC transposes or H-pads round-tripping HBM.
    For real shapes pick batches_per_block so nb*(H+2) >= ~258 to fill the
    256-wide MXU on v6e/v7x.
    """
    N = x_slab.shape[0]
    WCp = W * Cp
    nb = batches_per_block
    assert N % nb == 0, "batch must be divisible by batches_per_block"
    G = N // nb
    M = N * H * W                                   # elems per channel for BN

    fold = jnp.tile(jnp.eye(Cp, dtype=jnp.float32), (W, 1))    # (WCp, Cp) 0/1
    ones = jnp.ones((1, WCp), jnp.float32)
    zeros = jnp.zeros((1, WCp), jnp.float32)

    act_spec = pl.BlockSpec((nb, H, WCp), lambda i: (i, 0, 0))
    vec_spec = pl.BlockSpec((1, WCp), lambda i: (0, 0))
    band_spec = pl.BlockSpec((3, WCp, WCp), lambda i: (0, 0, 0))
    fold_spec = pl.BlockSpec((WCp, Cp), lambda i: (0, 0))
    stats_spec = pl.BlockSpec((1, 2, Cp), lambda i: (i, 0, 0))
    cparams = pltpu.CompilerParams(dimension_semantics=("parallel",))

    def conv_stage(src, scale_l, shift_l, band, prenorm):
        return pl.pallas_call(
            functools.partial(_conv_stats_kernel, prenorm=prenorm, H=H),
            grid=(G,),
            in_specs=[act_spec, vec_spec, vec_spec, band_spec, fold_spec],
            out_specs=(act_spec, stats_spec),
            out_shape=(jax.ShapeDtypeStruct((N, H, WCp), jnp.float32),
                       jax.ShapeDtypeStruct((G, 2, Cp), jnp.float32)),
            scratch_shapes=[pltpu.VMEM((nb * (H + 2), WCp), jnp.float32)],
            compiler_params=cparams,
        )(src, scale_l, shift_l, band, fold)

    # stage 1: conv1 + BN1 batch statistics
    y1, st1 = conv_stage(x_slab, ones, zeros, band1, prenorm=False)
    scale1, shift1 = _bn_affine(st1, g1p, b1p, M, W)

    # stage 2: bn1 + relu + conv2 + BN2 batch statistics
    y2, st2 = conv_stage(y1, scale1, shift1, band2, prenorm=True)
    scale2, shift2 = _bn_affine(st2, g2p, b2p, M, W)

    # stage 3: bn2 + identity shortcut (the LambdaLayer lambda) + relu
    out = pl.pallas_call(
        _bn_residual_relu_kernel,
        grid=(G,),
        in_specs=[act_spec, act_spec, vec_spec, vec_spec],
        out_specs=act_spec,
        out_shape=jax.ShapeDtypeStruct((N, H, WCp), jnp.float32),
        compiler_params=cparams,
    )(y2, x_slab, scale2, shift2)
    return out


# ---------------------------------------------------------------------------
# NCHW adapter (test harness only) + pure-JAX reference
# ---------------------------------------------------------------------------
def basic_block_nchw(x_nchw, w1, w2, g1, b1, g2, b2, *, batches_per_block=1):
    N, C, H, W = map(int, x_nchw.shape)
    Cp = _padded_channels(C, W)
    x = jnp.transpose(x_nchw, (0, 2, 3, 1))                    # NHWC
    if Cp != C:
        x = jnp.pad(x, ((0, 0), (0, 0), (0, 0), (0, Cp - C)))
    x_slab = x.reshape(N, H, W * Cp)

    band1 = _band_weights(w1, W, Cp)
    band2 = _band_weights(w2, W, Cp)

    def pad_c(v):      # gamma/beta padded with zeros -> pad channels stay 0
        v = v.astype(jnp.float32)
        if Cp == C:
            return v
        return jnp.concatenate([v, jnp.zeros((Cp - C,), jnp.float32)])

    out_slab = basic_block_slab(
        x_slab, band1, band2, pad_c(g1), pad_c(b1), pad_c(g2), pad_c(b2),
        H=H, W=W, Cp=Cp, batches_per_block=batches_per_block)

    out = out_slab.reshape(N, H, W, Cp)[..., :C]
    return jnp.transpose(out, (0, 3, 1, 2))                    # back to NCHW


def ref_forward(x, w1, w2, g1, b1, g2, b2):
    """Pure-JAX reference matching the PyTorch module (NCHW, exact f32)."""
    def conv(y, w):
        return jax.lax.conv_general_dilated(
            y, w, window_strides=(1, 1), padding=((1, 1), (1, 1)),
            dimension_numbers=("NCHW", "OIHW", "NCHW"),
            precision=jax.lax.Precision.HIGHEST)

    def bn(y, g, b):
        mu = y.mean(axis=(0, 2, 3), keepdims=True)
        var = ((y - mu) ** 2).mean(axis=(0, 2, 3), keepdims=True)
        return ((y - mu) / jnp.sqrt(var + EPS)) * g.reshape(1, -1, 1, 1) \
               + b.reshape(1, -1, 1, 1)

    out = jax.nn.relu(bn(conv(x, w1), g1, b1))
    out = bn(conv(out, w2), g2, b2)
    return jax.nn.relu(out + x)


if __name__ == "__main__":
    key = jax.random.PRNGKey(0)
    k_x, k_w1, k_w2 = jax.random.split(key, 3)

    N, C, H, W = 2, 4, 16, 16          # in_planes = planes = 4, stride = 1
    x = jax.random.normal(k_x, (N, C, H, W), dtype=jnp.float32)
    w1 = jax.random.normal(k_w1, (C, C, 3, 3), dtype=jnp.float32) * 0.1
    w2 = jax.random.normal(k_w2, (C, C, 3, 3), dtype=jnp.float32) * 0.1
    g1 = jnp.ones((C,), jnp.float32)    # nn.BatchNorm2d default init
    b1 = jnp.zeros((C,), jnp.float32)
    g2 = jnp.ones((C,), jnp.float32)
    b2 = jnp.zeros((C,), jnp.float32)

    out = jax.block_until_ready(
        basic_block_nchw(x, w1, w2, g1, b1, g2, b2, batches_per_block=1))
    ref = jax.block_until_ready(ref_forward(x, w1, w2, g1, b1, g2, b2))

    # The conv matmuls run in the MXU's default bf16-class single-pass mode
    # (bf16 weights + bf16-cast LHS, f32 accumulation), so compare against the
    # exact-f32 reference with a correspondingly relaxed tolerance.
    np.testing.assert_allclose(np.asarray(out), np.asarray(ref),
                               rtol=2e-2, atol=2e-2)
    print("KERNEL_OK")
</pallas_src>

<mosaic_0001>
module attributes {stable_mosaic.version = 11 : i64} {
  func.func @_conv_stats_kernel(%arg0: i32, %arg1: memref<1x16x128xf32, #tpu.memory_space<vmem>>, %arg2: memref<1x128xf32, #tpu.memory_space<vmem>>, %arg3: memref<1x128xf32, #tpu.memory_space<vmem>>, %arg4: memref<3x128x128xbf16, #tpu.memory_space<vmem>>, %arg5: memref<128x8xf32, #tpu.memory_space<vmem>>, %arg6: memref<1x16x128xf32, #tpu.memory_space<vmem>>, %arg7: memref<1x2x8xf32, #tpu.memory_space<vmem>>, %arg8: memref<18x128xf32, #tpu.memory_space<vmem>>) attributes {dimension_semantics = [#tpu.dimension_semantics<parallel>], iteration_bounds = array<i64: 2>, scalar_prefetch = 0 : i64, scratch_operands = 1 : i64, tpu.core_type = #tpu.core_type<tc>, window_params = [{transform_indices = @transform_0, window_bounds = array<i64: 1, 16, 128>}, {pipeline_mode = #tpu.pipeline_mode<synchronous>, transform_indices = @transform_1, window_bounds = array<i64: 1, 128>}, {pipeline_mode = #tpu.pipeline_mode<synchronous>, transform_indices = @transform_2, window_bounds = array<i64: 1, 128>}, {pipeline_mode = #tpu.pipeline_mode<synchronous>, transform_indices = @transform_3, window_bounds = array<i64: 3, 128, 128>}, {pipeline_mode = #tpu.pipeline_mode<synchronous>, transform_indices = @transform_4, window_bounds = array<i64: 128, 8>}, {transform_indices = @transform_5, window_bounds = array<i64: 1, 16, 128>}, {transform_indices = @transform_6, window_bounds = array<i64: 1, 2, 8>}]} {
    %cst = arith.constant 0.000000e+00 : f32
    %0 = vector.broadcast %cst : f32 to vector<1x128xf32>
    %c0 = arith.constant 0 : index
    %c0_0 = arith.constant 0 : index
    %c0_1 = arith.constant 0 : index
    %1 = vector.load %arg1[%c0, %c0_0, %c0_1] : memref<1x16x128xf32, #tpu.memory_space<vmem>>, vector<1x16x128xf32>
    %2 = vector.shape_cast %1 : vector<1x16x128xf32> to vector<16x128xf32>
    %c0_2 = arith.constant 0 : index
    %c0_3 = arith.constant 0 : index
    %3 = vector.load %arg8[%c0_2, %c0_3] : memref<18x128xf32, #tpu.memory_space<vmem>>, vector<1x128xf32>
    tpu.vector_store %arg8[%c0_2, %c0_3], %0 {strides = array<i32>} : memref<18x128xf32, #tpu.memory_space<vmem>>, vector<1x128xf32>,
    %c1 = arith.constant 1 : index
    %c0_4 = arith.constant 0 : index
    %4 = vector.load %arg8[%c1, %c0_4] : memref<18x128xf32, #tpu.memory_space<vmem>>, vector<16x128xf32>
    tpu.vector_store %arg8[%c1, %c0_4], %2 {strides = array<i32>} : memref<18x128xf32, #tpu.memory_space<vmem>>, vector<16x128xf32>,
    %c17 = arith.constant 17 : index
    %c0_5 = arith.constant 0 : index
    %5 = vector.load %arg8[%c17, %c0_5] : memref<18x128xf32, #tpu.memory_space<vmem>>, vector<1x128xf32>
    tpu.vector_store %arg8[%c17, %c0_5], %0 {strides = array<i32>} : memref<18x128xf32, #tpu.memory_space<vmem>>, vector<1x128xf32>,
    %cst_6 = arith.constant 0.000000e+00 : f32
    %6 = vector.broadcast %cst_6 : f32 to vector<16x128xf32>
    %c0_7 = arith.constant 0 : index
    %c0_8 = arith.constant 0 : index
    %7 = vector.load %arg8[%c0_7, %c0_8] : memref<18x128xf32, #tpu.memory_space<vmem>>, vector<16x128xf32>
    %8 = arith.truncf %7 : vector<16x128xf32> to vector<16x128xbf16>
    %c0_9 = arith.constant 0 : index
    %c0_10 = arith.constant 0 : index
    %c0_11 = arith.constant 0 : index
    %9 = vector.load %arg4[%c0_9, %c0_10, %c0_11] : memref<3x128x128xbf16, #tpu.memory_space<vmem>>, vector<1x128x128xbf16>
    %10 = vector.shape_cast %9 : vector<1x128x128xbf16> to vector<128x128xbf16>
    %cst_12 = arith.constant dense<0.000000e+00> : vector<16x128xf32>
    %11 = tpu.matmul %8, %10, %cst_12 {dimension_numbers = #tpu.dot_dimension_numbers<[1], [0], [0], [1], [0, 0, 1, 1], [], []>} : vector<16x128xbf16>, vector<128x128xbf16>, vector<16x128xf32> -> vector<16x128xf32>
    %12 = arith.addf %6, %11 : vector<16x128xf32>
    %c1_13 = arith.constant 1 : index
    %c0_14 = arith.constant 0 : index
    %13 = vector.load %arg8[%c1_13, %c0_14] : memref<18x128xf32, #tpu.memory_space<vmem>>, vector<16x128xf32>
    %14 = arith.truncf %13 : vector<16x128xf32> to vector<16x128xbf16>
    %c1_15 = arith.constant 1 : index
    %c0_16 = arith.constant 0 : index
    %c0_17 = arith.constant 0 : index
    %15 = vector.load %arg4[%c1_15, %c0_16, %c0_17] : memref<3x128x128xbf16, #tpu.memory_space<vmem>>, vector<1x128x128xbf16>
    %16 = vector.shape_cast %15 : vector<1x128x128xbf16> to vector<128x128xbf16>
    %cst_18 = arith.constant dense<0.000000e+00> : vector<16x128xf32>
    %17 = tpu.matmul %14, %16, %cst_18 {dimension_numbers = #tpu.dot_dimension_numbers<[1], [0], [0], [1], [0, 0, 1, 1], [], []>} : vector<16x128xbf16>, vector<128x128xbf16>, vector<16x128xf32> -> vector<16x128xf32>
    %18 = arith.addf %12, %17 : vector<16x128xf32>
    %c2 = arith.constant 2 : index
    %c0_19 = arith.constant 0 : index
    %19 = vector.load %arg8[%c2, %c0_19] : memref<18x128xf32, #tpu.memory_space<vmem>>, vector<16x128xf32>
    %20 = arith.truncf %19 : vector<16x128xf32> to vector<16x128xbf16>
    %c2_20 = arith.constant 2 : index
    %c0_21 = arith.constant 0 : index
    %c0_22 = arith.constant 0 : index
    %21 = vector.load %arg4[%c2_20, %c0_21, %c0_22] : memref<3x128x128xbf16, #tpu.memory_space<vmem>>, vector<1x128x128xbf16>
    %22 = vector.shape_cast %21 : vector<1x128x128xbf16> to vector<128x128xbf16>
    %cst_23 = arith.constant dense<0.000000e+00> : vector<16x128xf32>
    %23 = tpu.matmul %20, %22, %cst_23 {dimension_numbers = #tpu.dot_dimension_numbers<[1], [0], [0], [1], [0, 0, 1, 1], [], []>} : vector<16x128xbf16>, vector<128x128xbf16>, vector<16x128xf32> -> vector<16x128xf32>
    %24 = arith.addf %18, %23 : vector<16x128xf32>
    %cst_24 = arith.constant 0.000000e+00 : f32
    %25 = vector.broadcast %cst_24 : f32 to vector<1x128xf32>
    %cst_25 = arith.constant 0.000000e+00 : f32
    %26 = vector.broadcast %cst_25 : f32 to vector<1x128xf32>
    %c0_26 = arith.constant 0 : index
    %c0_27 = arith.constant 0 : index
    %c0_28 = arith.constant 0 : index
    %27 = vector.load %arg6[%c0_26, %c0_27, %c0_28] : memref<1x16x128xf32, #tpu.memory_space<vmem>>, vector<1x16x128xf32>
    %28 = vector.shape_cast %27 : vector<1x16x128xf32> to vector<16x128xf32>
    %29 = vector.shape_cast %24 : vector<16x128xf32> to vector<1x16x128xf32>
    tpu.vector_store %arg6[%c0_26, %c0_27, %c0_28], %29 {strides = array<i32>} : memref<1x16x128xf32, #tpu.memory_space<vmem>>, vector<1x16x128xf32>,
    %cst_29 = arith.constant dense<0.000000e+00> : vector<128xf32>
    %30 = vector.multi_reduction <add>, %24, %cst_29 [0] : vector<16x128xf32> to vector<128xf32>
    %31 = vector.shape_cast %30 : vector<128xf32> to vector<1x128xf32>
    %32 = arith.addf %25, %31 : vector<1x128xf32>
    %33 = arith.mulf %24, %24 : vector<16x128xf32>
    %cst_30 = arith.constant dense<0.000000e+00> : vector<128xf32>
    %34 = vector.multi_reduction <add>, %33, %cst_30 [0] : vector<16x128xf32> to vector<128xf32>
    %35 = vector.shape_cast %34 : vector<128xf32> to vector<1x128xf32>
    %36 = arith.addf %26, %35 : vector<1x128xf32>
    %c0_31 = arith.constant 0 : index
    %c0_32 = arith.constant 0 : index
    %37 = vector.load %arg5[%c0_31, %c0_32] : memref<128x8xf32, #tpu.memory_space<vmem>>, vector<128x8xf32>
    %cst_33 = arith.constant dense<0.000000e+00> : vector<1x8xf32>
    %38 = tpu.matmul %32, %37, %cst_33 {dimension_numbers = #tpu.dot_dimension_numbers<[1], [0], [0], [1], [0, 0, 1, 1], [], []>} : vector<1x128xf32>, vector<128x8xf32>, vector<1x8xf32> -> vector<1x8xf32>
    %c0_34 = arith.constant 0 : index
    %c0_35 = arith.constant 0 : index
    %c0_36 = arith.constant 0 : index
    %39 = vector.load %arg7[%c0_34, %c0_35, %c0_36] : memref<1x2x8xf32, #tpu.memory_space<vmem>>, vector<1x1x8xf32>
    %40 = vector.shape_cast %39 : vector<1x1x8xf32> to vector<1x8xf32>
    %41 = vector.shape_cast %38 : vector<1x8xf32> to vector<1x1x8xf32>
    tpu.vector_store %arg7[%c0_34, %c0_35, %c0_36], %41 {strides = array<i32>} : memref<1x2x8xf32, #tpu.memory_space<vmem>>, vector<1x1x8xf32>,
    %c0_37 = arith.constant 0 : index
    %c0_38 = arith.constant 0 : index
    %42 = vector.load %arg5[%c0_37, %c0_38] : memref<128x8xf32, #tpu.memory_space<vmem>>, vector<128x8xf32>
    %cst_39 = arith.constant dense<0.000000e+00> : vector<1x8xf32>
    %43 = tpu.matmul %36, %42, %cst_39 {dimension_numbers = #tpu.dot_dimension_numbers<[1], [0], [0], [1], [0, 0, 1, 1], [], []>} : vector<1x128xf32>, vector<128x8xf32>, vector<1x8xf32> -> vector<1x8xf32>
    %c0_40 = arith.constant 0 : index
    %c1_41 = arith.constant 1 : index
    %c0_42 = arith.constant 0 : index
    %44 = vector.load %arg7[%c0_40, %c1_41, %c0_42] : memref<1x2x8xf32, #tpu.memory_space<vmem>>, vector<1x1x8xf32>
    %45 = vector.shape_cast %44 : vector<1x1x8xf32> to vector<1x8xf32>
    %46 = vector.shape_cast %43 : vector<1x8xf32> to vector<1x1x8xf32>
    tpu.vector_store %arg7[%c0_40, %c1_41, %c0_42], %46 {strides = array<i32>} : memref<1x2x8xf32, #tpu.memory_space<vmem>>, vector<1x1x8xf32>,
    return
  }
  func.func @transform_0(%arg0: i32) -> (i32, i32, i32) {
    %c0_i32 = arith.constant 0 : i32
    %c0_i32_0 = arith.constant 0 : i32
    %c0_i32_1 = arith.constant 0 : i32
    return %arg0, %c0_i32, %c0_i32_0 : i32, i32, i32
  }
  func.func @transform_1(%arg0: i32) -> (i32, i32) {
    %c0_i32 = arith.constant 0 : i32
    %c0_i32_0 = arith.constant 0 : i32
    %c0_i32_1 = arith.constant 0 : i32
    return %c0_i32, %c0_i32_0 : i32, i32
  }
  func.func @transform_2(%arg0: i32) -> (i32, i32) {
    %c0_i32 = arith.constant 0 : i32
    %c0_i32_0 = arith.constant 0 : i32
    %c0_i32_1 = arith.constant 0 : i32
    return %c0_i32, %c0_i32_0 : i32, i32
  }
  func.func @transform_3(%arg0: i32) -> (i32, i32, i32) {
    %c0_i32 = arith.constant 0 : i32
    %c0_i32_0 = arith.constant 0 : i32
    %c0_i32_1 = arith.constant 0 : i32
    %c0_i32_2 = arith.constant 0 : i32
    return %c0_i32, %c0_i32_0, %c0_i32_1 : i32, i32, i32
  }
  func.func @transform_4(%arg0: i32) -> (i32, i32) {
    %c0_i32 = arith.constant 0 : i32
    %c0_i32_0 = arith.constant 0 : i32
    %c0_i32_1 = arith.constant 0 : i32
    return %c0_i32, %c0_i32_0 : i32, i32
  }
  func.func @transform_5(%arg0: i32) -> (i32, i32, i32) {
    %c0_i32 = arith.constant 0 : i32
    %c0_i32_0 = arith.constant 0 : i32
    %c0_i32_1 = arith.constant 0 : i32
    return %arg0, %c0_i32, %c0_i32_0 : i32, i32, i32
  }
  func.func @transform_6(%arg0: i32) -> (i32, i32, i32) {
    %c0_i32 = arith.constant 0 : i32
    %c0_i32_0 = arith.constant 0 : i32
    %c0_i32_1 = arith.constant 0 : i32
    return %arg0, %c0_i32, %c0_i32_0 : i32, i32, i32
  }
}

</mosaic_0001>

<bundles_post_ra>
// kernel: tpu_custom_call.1
= control target key start
LH: loop header
LB: loop body
LE: loop exit
PB: predicated region body
PF: predicated region fallthrough
CT: control target
= control target key end

     0   :  { %12 = vsyncpa [#allocation4], 0  ;;  %s1698_s0 = inlined_call_operand.vmem [shape: f32[2,16,128], index: 0, kind: input, shape index: {}]   ;;  %s1699_s1 = inlined_call_operand.vmem [shape: f32[1,128], index: 1, kind: input, shape index: {}]   ;;  %s1700_s2 = inlined_call_operand.vmem [shape: f32[1,128], index: 2, kind: input, shape index: {}]   ;;  %s1701_s3 = inlined_call_operand.hbm [shape: bf16[3,128,128], index: 3, kind: input, shape index: {}]   ;;  %s1702_s4 = inlined_call_operand.vmem [shape: f32[128,8], index: 4, kind: input, shape index: {}]   ;;  %s1703_s5 = inlined_call_operand.hbm [shape: f32[2,16,128], index: 5, kind: output, shape index: {0}]   ;;  %s1704_s6 = inlined_call_operand.hbm [shape: f32[2,2,8], index: 6, kind: output, shape index: {1}]  }
   0x1   :  { %13 = vsyncpa [#allocation5], 0 }
   0x2   :  { %15 = vsyncpa [#allocation5 + $0x1], 0 }
   0x3   :  { %16 = vsyncpa [#allocation8], 0 }
   0x4   :  { %18 = vsyncpa [#allocation8 + $0x1], 0  ;;  %s1429_s1 = smov 0   ;;  %s1431_s2 = smov 0  }
   0x5   :  { %s1433_s21 = smov 0   ;;  %s1435_s22 = smov 0  }
   0x6 LB: > { %s1450_s23 = sadd.s32 4294967295, %s1383_s22   ;;  %s944_s24 = sadd.s32 4294967294, %s1383_s22   ;;  %s1383_s22 = sphi %s1435_s22, %s1712_s22   ;;  %s1379_s21 = sphi %s1433_s21, %s1711_s21   ;;  %s1375_s2 = sphi %s1431_s2, %s1710_s2   ;;  %s1371_s1 = sphi %s1429_s1, %s1709_s1  }
   0x7   : > { %s1454_s25 = sadd.s32 1, %s1383_s22   ;;  %s141_s26 = sadd.s32 1, %s1379_s21 }
   0x8   : > { %s138_s27 = ssub.s32 %s1383_s22, %s1454_s25  ;;  %p151_p0 = scmp.ne.s32.totalorder %s1379_s21, %s1375_s2 }
   0x9   : > { %p139_p1 = scmp.eq.s32.totalorder %s138_s27, 0  ;;  %p152_p2 = scmp.eq.s32.totalorder %s1450_s23, 1 }
   0xa   : > { %p157_p3 = scmp.ne.s32.totalorder %s1375_s2, %s1371_s1  ;;  %p158_p4 = scmp.eq.s32.totalorder %s944_s24, 1 }
   0xb   : > { %s1465_s28 = scalar_select %p139_p1, %s1379_s21, %s141_s26  }
   0xc   : > { %p1467_p5 = por %p152_p2, %p151_p0  ;;  %p1471_p6 = por %p158_p4, %p157_p3 }
   0xd   : > { %p945_p7 = scmp.ge.s32.totalorder %s1383_s22, 1  ;;  %p191_p8 = scmp.lt.s32.totalorder %s1383_s22, 3 }
   0xe   : > { %s1706_s30 = scalar_select %p1471_p6, 1, 0 }
   0xf   : > { %p1197_p9 = scmp.eq.s32.totalorder %s1450_s23, 0  ;;  %p1478_p10 = pnand %p945_p7, %p191_p8 }
  0x10   : > { %s1385_s8 = smov [#allocation3]  }
  0x11   : > { %s209_s9 = sshll.u32 %s1385_s8, 4  ;;  %p1186_p11 = pneg %p1478_p10  ;;  %s210_s9 = int_to_ptr.vmem [resolvable:$true] %s209_s9 }
  0x12   : > { %s1274_s10 = scalar_lea.vmem %s210_s9, 3072  ;;  %p1282_p3 = scmp.lt.s32.totalorder %s210_s9, %s210_s9 }
  0x13   : > { %p1187_p12 = pnand %p1197_p9, %p1186_p11  ;;  %p1275_p0 = scmp.ne.s32.totalorder %s210_s9, %s1274_s10 }
  0x14   : > { %p1283_p4 = scmp.lt.s32.totalorder %s1274_s10, %s1274_s10 }
  0x15   : > { %p1265_p13 = pneg %p1187_p12 }
  0x16   : > { %p1284_p6 = por %p1283_p4, %p1282_p3 }
  0x17   : > { %p1277_p1 = pnand %p1275_p0, %p1265_p13 }
  0x19   : > { %p1278_p2 = pneg %p1277_p1 }
  0x1b   : > { %p1285_p7 = pnand %p1284_p6, %p1278_p2 }
  0x1d   : > { %1288 = shalt.err (!%p1285_p7)
}
  0x1e   : > { %s1386_s11 = smov 64   ;;  %s1387_s12 = smov 4  }
  0x1f   : > { %1189 = dma.hbm_to_vmem [thread:$0]  (!%p1187_p12), %s1701_s3, 3072, %s210_s9, [#allocation4], %s1386_s11, %s1386_s11, %s1387_s12  }
  0x20   : > { %236 = sbr.rel (%p1478_p10) target bundleno = 526 (0x20e), region = 40 }
  0x25   : > { %1358 = dma.done.wait (%p1197_p9), [#allocation4], 3072  }
  0x26   : > { %1360 = vsyncadd (%p1197_p9), [#allocation4], 4294964224  ;;  %v1388_v0 = vmov 0.0   ;;  %vm1389_vm0 = vmmov 0   ;;  %v1239_v1 = vld [vmem:[#allocation3 + $0x78] sm:$0xff]   ;;  %v1241_v3 = vld [vmem:[#allocation3 + $0x70] sm:$0xff]  }
  0x27   : > { %1048 = vmatprep.subr.bf16.mxu0 %v1388_v0  ;;  %279 = vst [vmem:[#allocation2] sm:$0x1] %v1388_v0  ;;  %282 = vst [vmem:[#allocation2 + $0x11] sm:$0x1] %v1388_v0  ;;  %1068 = vmatprep.subr.bf16.mxu1 %v1388_v0  ;;  %v1240_v2 = vld [vmem:[#allocation3 + $0x38] sm:$0xff]   ;;  %p271_p6 = scmp.lt.s32.totalorder %s1450_s23, 1 }
  0x28   : > { %1064 = vmatprep.mubr.msk.bf16.mxu0 %vm1389_vm0, %v1388_v0  ;;  %1084 = vmatprep.mubr.msk.bf16.mxu1 %vm1389_vm0, %v1388_v0  ;;  %v1242_v4 = vld [vmem:[#allocation3 + $0x30] sm:$0xff]   ;;  %v1243_v5 = vld [vmem:[#allocation3 + $0x68] sm:$0xff]   ;;  %v1245_v7 = vld [vmem:[#allocation3 + $0x60] sm:$0xff]   ;;  %s1617_s18 = sand.u32 1, %s1375_s2   ;;  %s986_s26 = sshll.u32 %s1450_s23, 8 }
  0x29   : > { %1049 = vmatpush3.bf16.msra.mxu0 %v1239_v1  ;;  %1069 = vmatpush3.bf16.msra.mxu1 %v1240_v2  ;;  %s272_s15 = scalar_select %p271_p6, %s1450_s23, 1  ;;  %v1244_v6 = vld [vmem:[#allocation3 + $0x28] sm:$0xff]   ;;  %v1246_v8 = vld [vmem:[#allocation3 + $0x20] sm:$0xff]   ;;  %v1247_v9 = vld [vmem:[#allocation3 + $0x58] sm:$0xff]  }
  0x2a   : > { %1050 = vmatprep.subr.bf16.mxu0 %v1388_v0  ;;  %1070 = vmatprep.subr.bf16.mxu1 %v1388_v0  ;;  %v1248_v10 = vld [vmem:[#allocation3 + $0x18] sm:$0xff]   ;;  %v1249_v13 = vld [vmem:[#allocation3 + $0x50] sm:$0xff]   ;;  %v1251_v15 = vld [vmem:[#allocation3 + $0x48] sm:$0xff]   ;;  %s1626_s8 = scalar_lea.hbm %s1703_s5, %s986_s26  ;;  %s807_s9 = scalar_lea.sflag [#allocation5], %s1617_s18 }
  0x2b   : > { %s985_s16 = sshll.u32 %s272_s15, 4  ;;  %v1250_v14 = vld [vmem:[#allocation3 + $0x10] sm:$0xff]   ;;  %v1252_v16 = vld [vmem:[#allocation3 + $0x8] sm:$0xff]   ;;  %v1253_v17 = vld [vmem:[#allocation3 + $0x40] sm:$0xff]   ;;  %s1390_s11 = smov [#allocation6]  }
  0x2c   : > { %s275_s19 = scalar_lea.vmem %s1698_s0, %s985_s16  ;;  %v1254_v18 = vld [vmem:[#allocation3] sm:$0xff]   ;;  %v1255_v23 = vld [vmem:[#allocation3 + $0xb8] sm:$0xff]   ;;  %v1256_v24 = vld [vmem:[#allocation3 + $0xb0] sm:$0xff]   ;;  %s1293_s12 = sshll.u32 %s1390_s11, 4  ;;  %s1294_s12 = int_to_ptr.vmem [resolvable:$false] %s1293_s12 }
  0x2d   : > { %1051 = vmatpush3.bf16.msra.mxu0 %v1241_v3  ;;  %1071 = vmatpush3.bf16.msra.mxu1 %v1242_v4  ;;  %v277_v11 = vld [vmem:[%s275_s19] sm:$0xff]  ;;  %v278_v12 = vld [vmem:[%s275_s19 + $0x8] sm:$0xff]  ;;  %v1258_v26 = vld [vmem:[#allocation3 + $0xa0] sm:$0xff]   ;;  %s950_s19 = sshll.u32 %s1617_s18, 4  ;;  %s1295_s13 = scalar_lea.vmem %s1294_s12, 512 }
  0x2e   : > { %1052 = vmatprep.subr.bf16.mxu0 %v1388_v0  ;;  %1072 = vmatprep.subr.bf16.mxu1 %v1388_v0  ;;  %280 = vst [vmem:[#allocation2 + $0x1] sm:$0xff] %v277_v11  ;;  %281 = vst [vmem:[#allocation2 + $0x9] sm:$0xff] %v278_v12  ;;  %v304_v21 = vpack.c.bf16 %v278_v12, %v277_v11  ;;  %v1257_v25 = vld [vmem:[#allocation3 + $0xa8] sm:$0xff]   ;;  %v1259_v27 = vld [vmem:[#allocation3 + $0x98] sm:$0xff]   ;;  %s263_s20 = scalar_lea.vmem [#allocation6], %s950_s19 }
  0x2f   : > { %v1260_v28 = vld [vmem:[#allocation3 + $0x90] sm:$0xff]   ;;  %v1261_v29 = vld [vmem:[#allocation3 + $0x88] sm:$0xff]   ;;  %v1262_v30 = vld [vmem:[#allocation3 + $0x80] sm:$0xff]   ;;  %s825_s24 = sshll.u32 %s263_s20, 4  ;;  %s1620_s24 = int_to_ptr.vmem [resolvable:$true] %s825_s24 }
  0x30   : > { %v646_v34 = vld [vmem:[%s1702_s4 + $0x78] sm:$0xff]  ;;  %v645_v35 = vld [vmem:[%s1702_s4 + $0x70] sm:$0xff]  ;;  %v644_v36 = vld [vmem:[%s1702_s4 + $0x68] sm:$0xff]  ;;  %s1289_s10 = scalar_lea.vmem %s1620_s24, 256  ;;  %p1296_p11 = scmp.lt.s32.totalorder %s1620_s24, %s1294_s12 }
  0x31   : > { %1053 = vmatpush3.bf16.msra.mxu0 %v1243_v5  ;;  %1073 = vmatpush3.bf16.msra.mxu1 %v1244_v6  ;;  %v643_v37 = vld [vmem:[%s1702_s4 + $0x60] sm:$0xff]  ;;  %v642_v38 = vld [vmem:[%s1702_s4 + $0x58] sm:$0xff]  ;;  %v641_v39 = vld [vmem:[%s1702_s4 + $0x50] sm:$0xff]  ;;  %p1290_p8 = scmp.ne.s32.totalorder %s1620_s24, %s1289_s10  ;;  %p1297_p12 = scmp.lt.s32.totalorder %s1295_s13, %s1289_s10 }
  0x32   : > { %1054 = vmatprep.subr.bf16.mxu0 %v1388_v0  ;;  %1074 = vmatprep.subr.bf16.mxu1 %v1388_v0  ;;  %v640_v40 = vld [vmem:[%s1702_s4 + $0x48] sm:$0xff]  ;;  %v639_v41 = vld [vmem:[%s1702_s4 + $0x40] sm:$0xff]  ;;  %v638_v42 = vld [vmem:[%s1702_s4 + $0x38] sm:$0xff] }
  0x33   : > { %v637_v43 = vld [vmem:[%s1702_s4 + $0x30] sm:$0xff]  ;;  %v636_v44 = vld [vmem:[%s1702_s4 + $0x28] sm:$0xff]  ;;  %v635_v45 = vld [vmem:[%s1702_s4 + $0x20] sm:$0xff]  ;;  %p1291_p9 = pnand %p1290_p8, %p1467_p5  ;;  %p1298_p13 = por %p1297_p12, %p1296_p11 }
  0x34   : > { %v634_v46 = vld [vmem:[%s1702_s4 + $0x18] sm:$0xff]  ;;  %v633_v47 = vld [vmem:[%s1702_s4 + $0x10] sm:$0xff]  ;;  %v632_v48 = vld [vmem:[%s1702_s4 + $0x8] sm:$0xff] }
  0x35   : > { %1055 = vmatpush3.bf16.msra.mxu0 %v1245_v7  ;;  %1075 = vmatpush3.bf16.msra.mxu1 %v1246_v8  ;;  %v283_v19 = vld [vmem:[#allocation2] sm:$0xff]  ;;  %v284_v20 = vld [vmem:[#allocation2 + $0x8] sm:$0xff]  ;;  %p1292_p10 = pneg %p1291_p9 }
  0x36   : > { %1056 = vmatprep.subr.bf16.mxu0 %v1388_v0  ;;  %1076 = vmatprep.subr.bf16.mxu1 %v1388_v0  ;;  %v285_v22 = vpack.c.bf16 %v284_v20, %v283_v19  ;;  %v500_v31 = vld [vmem:[#allocation2 + $0x2] sm:$0xff]  ;;  %v501_v32 = vld [vmem:[#allocation2 + $0xa] sm:$0xff] }
  0x37   : > { %v502_v33 = vpack.c.bf16 %v501_v32, %v500_v31  ;;  %v631_v49 = vld [vmem:[%s1702_s4] sm:$0xff]  ;;  %p1299_p0 = pnand %p1298_p13, %p1292_p10 }
  0x39   : > { %1057 = vmatpush3.bf16.msra.mxu0 %v1247_v9  ;;  %1077 = vmatpush3.bf16.msra.mxu1 %v1248_v10 }
  0x3a   : > { %1058 = vmatprep.subr.bf16.mxu0 %v1388_v0  ;;  %1078 = vmatprep.subr.bf16.mxu1 %v1388_v0 }
  0x3d   : > { %1059 = vmatpush3.bf16.msra.mxu0 %v1249_v13  ;;  %1079 = vmatpush3.bf16.msra.mxu1 %v1250_v14 }
  0x3e   : > { %1060 = vmatprep.subr.bf16.mxu0 %v1388_v0  ;;  %1080 = vmatprep.subr.bf16.mxu1 %v1388_v0 }
  0x41   : > { %1061 = vmatpush3.bf16.msra.mxu0 %v1251_v15  ;;  %1081 = vmatpush3.bf16.msra.mxu1 %v1252_v16 }
  0x42   : > { %1062 = vmatprep.subr.bf16.mxu0 %v1388_v0  ;;  %1082 = vmatprep.subr.bf16.mxu1 %v1388_v0 }
  0x45   : > { %1063 = vmatpush3.bf16.msra.mxu0 %v1253_v17  ;;  %1083 = vmatpush3.bf16.msra.mxu1 %v1254_v18 }
  0x46   : > { %1088 = vmatprep.subr.bf16.mxu0 %v1388_v0  ;;  %1108 = vmatprep.subr.mxu1 %v1388_v0 }
  0x48   : > { %1065 = vmatmul.mubr.bf16.vlgmr.msra.gmra.mxu0 %v304_v21  ;;  %1085 = vmatmul.mubr.bf16.vlgmr.msra.gmra.mxu1 %v285_v22 }
  0x49   : > { %1089 = vmatpush3.bf16.msra.mxu0 %v1255_v23  ;;  %1104 = vmatprep.mubr.msk.bf16.mxu0 %vm1389_vm0, %v1388_v0 }
  0x4a   : > { %1090 = vmatprep.subr.bf16.mxu0 %v1388_v0  ;;  %1140 = vmatprep.mubr.msk.f32.mxu1 %vm1389_vm0, %v1388_v0 }
  0x4b   : > { %1109 = vmatpush3.msra.mxu1 %v646_v34 }
  0x4c   : > { %1110 = vmatprep.subr.mxu1 %v1388_v0 }
  0x4d   : > { %1091 = vmatpush3.bf16.msra.mxu0 %v1256_v24  ;;  %1111 = vmatpush3.msra.mxu1 %v645_v35 }
  0x4e   : > { %1092 = vmatprep.subr.bf16.mxu0 %v1388_v0  ;;  %1112 = vmatprep.subr.mxu1 %v1388_v0 }
  0x4f   : > { %1113 = vmatpush3.msra.mxu1 %v644_v36 }
  0x50   : > { %1114 = vmatprep.subr.mxu1 %v1388_v0 }
  0x51   : > { %1093 = vmatpush3.bf16.msra.mxu0 %v1257_v25  ;;  %1115 = vmatpush3.msra.mxu1 %v643_v37 }
  0x52   : > { %1094 = vmatprep.subr.bf16.mxu0 %v1388_v0  ;;  %1116 = vmatprep.subr.mxu1 %v1388_v0 }
  0x53   : > { %1117 = vmatpush3.msra.mxu1 %v642_v38 }
  0x54   : > { %1118 = vmatprep.subr.mxu1 %v1388_v0 }
  0x55   : > { %1095 = vmatpush3.bf16.msra.mxu0 %v1258_v26  ;;  %1119 = vmatpush3.msra.mxu1 %v641_v39 }
  0x56   : > { %1096 = vmatprep.subr.bf16.mxu0 %v1388_v0  ;;  %1120 = vmatprep.subr.mxu1 %v1388_v0 }
  0x57   : > { %1121 = vmatpush3.msra.mxu1 %v640_v40 }
  0x58   : > { %1122 = vmatprep.subr.mxu1 %v1388_v0 }
  0x59   : > { %1097 = vmatpush3.bf16.msra.mxu0 %v1259_v27  ;;  %1123 = vmatpush3.msra.mxu1 %v639_v41 }
  0x5a   : > { %1098 = vmatprep.subr.bf16.mxu0 %v1388_v0  ;;  %1124 = vmatprep.subr.mxu1 %v1388_v0 }
  0x5b   : > { %1125 = vmatpush3.msra.mxu1 %v638_v42 }
  0x5c   : > { %1126 = vmatprep.subr.mxu1 %v1388_v0 }
  0x5d   : > { %1099 = vmatpush3.bf16.msra.mxu0 %v1260_v28  ;;  %1127 = vmatpush3.msra.mxu1 %v637_v43 }
  0x5e   : > { %1100 = vmatprep.subr.bf16.mxu0 %v1388_v0  ;;  %1128 = vmatprep.subr.mxu1 %v1388_v0 }
  0x5f   : > { %1129 = vmatpush3.msra.mxu1 %v636_v44 }
  0x60   : > { %1130 = vmatprep.subr.mxu1 %v1388_v0 }
  0x61   : > { %1101 = vmatpush3.bf16.msra.mxu0 %v1261_v29  ;;  %1131 = vmatpush3.msra.mxu1 %v635_v45 }
  0x62   : > { %1102 = vmatprep.subr.bf16.mxu0 %v1388_v0  ;;  %1132 = vmatprep.subr.mxu1 %v1388_v0 }
  0x63   : > { %1133 = vmatpush3.msra.mxu1 %v634_v46 }
  0x64   : > { %1134 = vmatprep.subr.mxu1 %v1388_v0 }
  0x65   : > { %1103 = vmatpush3.bf16.msra.mxu0 %v1262_v30  ;;  %1135 = vmatpush3.msra.mxu1 %v633_v47 }
  0x66   : > { %1143 = vmatprep.subr.mxu0 %v1388_v0  ;;  %1136 = vmatprep.subr.mxu1 %v1388_v0 }
  0x67   : > { %1137 = vmatpush3.msra.mxu1 %v632_v48 }
  0x68   : > { %1105 = vmatmul.mubr.bf16.vlgmr.msra.gmra.mxu0 %v502_v33  ;;  %1138 = vmatprep.subr.mxu1 %v1388_v0 }
  0x69   : > { %1175 = vmatprep.mubr.msk.f32.mxu0 %vm1389_vm0, %v1388_v0  ;;  %1144 = vmatpush3.msra.mxu0 %v646_v34 }
  0x6a   : > { %1145 = vmatprep.subr.mxu0 %v1388_v0  ;;  %1139 = vmatpush3.msra.mxu1 %v631_v49 }
  0x6b   : > { %1146 = vmatpush3.msra.mxu0 %v645_v35 }
  0x6c   : > { %1147 = vmatprep.subr.mxu0 %v1388_v0 }
  0x6d   : > { %1148 = vmatpush3.msra.mxu0 %v644_v36 }
  0x6e   : > { %1149 = vmatprep.subr.mxu0 %v1388_v0 }
  0x6f   : > { %1150 = vmatpush3.msra.mxu0 %v643_v37 }
  0x70   : > { %1151 = vmatprep.subr.mxu0 %v1388_v0 }
  0x71   : > { %1152 = vmatpush3.msra.mxu0 %v642_v38 }
  0x72   : > { %1153 = vmatprep.subr.mxu0 %v1388_v0 }
  0x73   : > { %1154 = vmatpush3.msra.mxu0 %v641_v39 }
  0x74   : > { %1155 = vmatprep.subr.mxu0 %v1388_v0 }
  0x75   : > { %1156 = vmatpush3.msra.mxu0 %v640_v40 }
  0x76   : > { %1157 = vmatprep.subr.mxu0 %v1388_v0 }
  0x77   : > { %1158 = vmatpush3.msra.mxu0 %v639_v41 }
  0x78   : > { %1159 = vmatprep.subr.mxu0 %v1388_v0 }
  0x79   : > { %1160 = vmatpush3.msra.mxu0 %v638_v42 }
  0x7a   : > { %1161 = vmatprep.subr.mxu0 %v1388_v0 }
  0x7b   : > { %1162 = vmatpush3.msra.mxu0 %v637_v43 }
  0x7c   : > { %1163 = vmatprep.subr.mxu0 %v1388_v0 }
  0x7d   : > { %1164 = vmatpush3.msra.mxu0 %v636_v44 }
  0x7e   : > { %1165 = vmatprep.subr.mxu0 %v1388_v0 }
  0x7f   : > { %1166 = vmatpush3.msra.mxu0 %v635_v45 }
  0x80   : > { %1167 = vmatprep.subr.mxu0 %v1388_v0 }
  0x81   : > { %1168 = vmatpush3.msra.mxu0 %v634_v46 }
  0x82   : > { %1169 = vmatprep.subr.mxu0 %v1388_v0 }
  0x83   : > { %1170 = vmatpush3.msra.mxu0 %v633_v47 }
  0x84   : > { %1171 = vmatprep.subr.mxu0 %v1388_v0 }
  0x85   : > { %1172 = vmatpush3.msra.mxu0 %v632_v48 }
  0x86   : > { %1173 = vmatprep.subr.mxu0 %v1388_v0 }
  0x87   : > { %1174 = vmatpush3.msra.mxu0 %v631_v49 }
 0x108   : > { %v404_v50 = vpop.f32.mrf.mxu0  ;;  %v493_v51 = vpop.f32.mrf.mxu1 }
 0x109   : > { %v494_v58 = vadd.f32 %v493_v51, %v404_v50 }
 0x10a   : > { %v1066_v52 = vpop.f32.mrf.mxu0  ;;  %v1086_v53 = vpop.f32.mrf.mxu1 }
 0x10c   : > { %v407_v54 = vpop.f32.mrf.mxu0  ;;  %v496_v55 = vpop.f32.mrf.mxu1 }
 0x10d   : > { %v497_v62 = vadd.f32 %v496_v55, %v407_v54 }
 0x10e   : > { %v1067_v56 = vpop.f32.mrf.mxu0  ;;  %v1087_v57 = vpop.f32.mrf.mxu1 }
 0x128   : > { %v602_v59 = vpop.f32.mrf.mxu0 }
 0x129   : > { %v609_v60 = vadd.f32 %v602_v59, %v494_v58 }
 0x12a   : > { %v1106_v61 = vpop.f32.mrf.mxu0 }
 0x12b   : > { %611 = vst [vmem:[%s263_s20] sm:$0xff] %v609_v60  ;;  %v621_v2 = vmul.f32 %v609_v60, %v609_v60 }
 0x12c   : > { %v605_v63 = vpop.f32.mrf.mxu0 }
 0x12d   : > { %v610_v0 = vadd.f32 %v605_v63, %v497_v62 }
 0x12e   : > { %v1107_v1 = vpop.f32.mrf.mxu0 }
 0x12f   : > { %612 = vst [vmem:[%s263_s20 + $0x8] sm:$0xff] %v610_v0  ;;  %v613_v3 = vadd.f32 %v610_v0, %v609_v60  ;;  %v622_v4 = vmul.f32 %v610_v0, %v610_v0 }
 0x131   : > { %v614_v5 = vrot.slane %v613_v3, 4  ;;  %v623_v6 = vadd.f32 %v622_v4, %v621_v2 }
 0x133   : > { %v615_v7 = vadd.f32 %v614_v5, %v613_v3  ;;  %v624_v8 = vrot.slane %v623_v6, 4 }
 0x135   : > { %v616_v9 = vrot.slane %v615_v7, 2  ;;  %v625_v10 = vadd.f32 %v624_v8, %v623_v6 }
 0x137   : > { %v617_v11 = vadd.f32 %v616_v9, %v615_v7  ;;  %v626_v12 = vrot.slane %v625_v10, 2 }
 0x139   : > { %v618_v13 = vrot.slane %v617_v11, 1  ;;  %v627_v14 = vadd.f32 %v626_v12, %v625_v10 }
 0x13b   : > { %v619_v15 = vadd.f32 %v618_v13, %v617_v11  ;;  %v628_v16 = vrot.slane %v627_v14, 1 }
 0x13d   : > { %1141 = vmatmul.mubr.f32.vlgmr.msra.gmra.mxu1 %v619_v15  ;;  %v629_v17 = vadd.f32 %v628_v16, %v627_v14 }
 0x13f   : > { %1176 = vmatmul.mubr.f32.vlgmr.msra.gmra.mxu0 %v629_v17 }
 0x140   : > { %1302 = shalt.err (!%p1299_p0)
}
 0x141   : > { %s1303_s14 = scalar_lea.hbm %s1626_s8, 256  ;;  %s1307_s17 = scalar_lea.hbm %s1703_s5, 512 }
 0x142   : > { %p1304_p1 = scmp.ne.s32.totalorder %s1626_s8, %s1303_s14  ;;  %p1308_p4 = scmp.lt.s32.totalorder %s1626_s8, %s1703_s5 }
 0x143   : > { %p1309_p7 = scmp.lt.s32.totalorder %s1307_s17, %s1303_s14 }
 0x144   : > { %p1305_p2 = pnand %p1304_p1, %p1467_p5 }
 0x145   : > { %p1310_p6 = por %p1309_p7, %p1308_p4 }
 0x146   : > { %p1306_p3 = pneg %p1305_p2 }
 0x148   : > { %p1311_p8 = pnand %p1310_p6, %p1306_p3 }
 0x14a   : > { %1314 = shalt.err (!%p1311_p8)
}
 0x14b   : > { %s1391_s26 = smov 128   ;;  %s1392_s27 = smov 8   ;;  %vm717_vm1 = vcmask 57344  }
 0x14c   : > { %1182 = dma.vmem_to_hbm [thread:$0]  (%p1467_p5), %s1620_s24, 256, %s1626_s8, %s807_s9, %s1391_s26, %s1391_s26, %s1392_s27  }
 0x14d   : > { %s951_s7 = sshll.u32 %s1617_s18, 1  ;;  %s982_s10 = sshll.u32 %s1450_s23, 5 }
 0x14e   : > { %s270_s11 = scalar_lea.vmem [#allocation7], %s951_s7  ;;  %s1656_s15 = scalar_lea.hbm %s1704_s6, %s982_s10 }
 0x14f   : > { %s841_s12 = sshll.u32 %s270_s11, 4  ;;  %s812_s24 = scalar_lea.sflag [#allocation8], %s1617_s18  ;;  %s1658_s12 = int_to_ptr.vmem [resolvable:$true] %s841_s12 }
 0x150   : > { %s1315_s23 = scalar_lea.vmem %s1658_s12, 32  ;;  %s1393_s8 = smov [#allocation7]  }
 0x151   : > { %p1316_p9 = scmp.ne.s32.totalorder %s1658_s12, %s1315_s23  ;;  %s1319_s9 = sshll.u32 %s1393_s8, 4  ;;  %s1320_s9 = int_to_ptr.vmem [resolvable:$false] %s1319_s9 }
 0x152   : > { %s1321_s16 = scalar_lea.vmem %s1320_s9, 64  ;;  %p1322_p12 = scmp.lt.s32.totalorder %s1658_s12, %s1320_s9 }
 0x153   : > { %p1317_p10 = pnand %p1316_p9, %p1467_p5  ;;  %p1323_p13 = scmp.lt.s32.totalorder %s1321_s16, %s1315_s23 }
 0x155   : > { %p1318_p11 = pneg %p1317_p10  ;;  %p1324_p0 = por %p1323_p13, %p1322_p12 }
 0x157   : > { %p1325_p1 = pnand %p1324_p0, %p1318_p11 }
 0x1fd   : > { %v713_v18 = vpop.f32.mrf.mxu1 }
 0x1fe   : > { %718 = vst.msk [vmem:[%s270_s11] sm:$0x1] %vm717_vm1, %v713_v18 }
 0x1ff   : > { %v1142_v19 = vpop.f32.mrf.mxu1  ;;  %v801_v20 = vpop.f32.mrf.mxu0 }
 0x200   : > { %805 = vst.msk [vmem:[%s270_s11 + $0x1] sm:$0x1] %vm717_vm1, %v801_v20 }
 0x201   : > { %v1177_v21 = vpop.f32.mrf.mxu0 }
 0x202   : > { %1328 = shalt.err (!%p1325_p1)
}
 0x203   : > { %s1329_s17 = scalar_lea.hbm %s1656_s15, 32  ;;  %s1333_s20 = scalar_lea.hbm %s1704_s6, 64 }
 0x204   : > { %p1330_p2 = scmp.ne.s32.totalorder %s1656_s15, %s1329_s17  ;;  %p1334_p7 = scmp.lt.s32.totalorder %s1656_s15, %s1704_s6 }
 0x205   : > { %p1335_p6 = scmp.lt.s32.totalorder %s1333_s20, %s1329_s17 }
 0x206   : > { %p1331_p3 = pnand %p1330_p2, %p1467_p5 }
 0x207   : > { %p1336_p8 = por %p1335_p6, %p1334_p7 }
 0x208   : > { %p1332_p4 = pneg %p1331_p3 }
 0x20a   : > { %p1337_p9 = pnand %p1336_p8, %p1332_p4 }
 0x20c   : > { %1340 = shalt.err (!%p1337_p9)
}
 0x20d   : > { %1183 = dma.vmem_to_hbm [thread:$0]  (%p1467_p5), %s1658_s12, 32, %s1656_s15, %s812_s24  }
 0x20e PF: > { %p1199_p10 = scmp.ge.s32.totalorder %s1383_s22, 2  ;;  %s853_s7 = sand.u32 1, %s1371_s1  }
 0x20f   : > { %p1708_p11 = scmp.ne.s32.totalorder %s1706_s30, 0  ;;  %s854_s10 = scalar_lea.sflag [#allocation5], %s853_s7 }
 0x211   : > { %p1191_p12 = pnand %p1199_p10, %p1708_p11 }
 0x213   : > { %p1192_p13 = pneg %p1191_p12 }
 0x215   : > { %1362 = dma.done.wait (%p1192_p13), %s854_s10, 256  }
 0x216   : > { %1364 = vsyncadd (%p1192_p13), %s854_s10, 4294967040  ;;  %s863_s11 = scalar_lea.sflag [#allocation8], %s853_s7 }
 0x217   : > { %1366 = dma.done.wait (%p1192_p13), %s863_s11, 32  }
 0x218   : > { %1368 = vsyncadd (%p1192_p13), %s863_s11, 4294967264  ;;  %p21_p5 = scmp.ge.s32.totalorder %s1454_s25, 4   ;;  %s1709_s1 = smov %s1375_s2 }
 0x219   : > { %s1710_s2 = smov %s1379_s21  ;;  %s1711_s21 = smov %s1465_s28 }
 0x21a   : > { %s1712_s22 = smov %s1454_s25  ;;  %23 = sbr.rel (!%p21_p5) target bundleno = 6 (0x6), region = 99 }
 0x21f   :  { %868 = vsyncpa [#allocation4], 1 }
 0x220   :  { %870 = vsyncpa [#allocation4 + $0x1], 1 }
 0x221   :  { %871 = vsyncpa [#allocation5], 1 }
 0x222   :  { %873 = vsyncpa [#allocation5 + $0x1], 1 }
 0x223   :  { %874 = vsyncpa [#allocation8], 1 }
 0x224   :  { %876 = vsyncpa [#allocation8 + $0x1], 1 }

</bundles_post_ra>
